<compile_context>
chip_gen: v7x
topology: tpu7x:2x2x1
jax: 0.10.0
libtpu: 0.0.40
codegen_flags: <defaults>
</compile_context>

<pallas_src>
import functools

import jax
import jax.numpy as jnp
from jax.experimental import pallas as pl
from jax.experimental.pallas import tpu as pltpu

_LANE = 128       # lane width (last-dim tiling unit)
_SUBLANE_F32 = 8  # f32 sublane (second-to-last-dim tiling unit)


def _round_up(v: int, m: int) -> int:
    return ((v + m - 1) // m) * m


def _vmem_cap_bytes() -> int:
    """Per-generation VMEM clamp: 75% of physical, 48 MiB fallback (v7x-safe)."""
    try:
        info = pltpu.get_tpu_info()
        cap = getattr(info, "vmem_capacity_bytes", None)
        if cap:
            return int(cap) * 3 // 4
    except Exception:
        pass
    return 48 << 20


def _mlp_kernel_resident(x_ref, w1_ref, b1_ref, w2_ref, b2_ref, o_ref):
    """Fused Linear -> ReLU -> Linear; all weights resident, 1-D batch grid."""
    # Cast the x tile to the weight dtype inside the kernel (no extra HBM pass
    # over the batch array on the host).  MXU accumulates in f32; bias + ReLU
    # epilogue stays in f32 on the VPU (safe on v5e which has no bf16 VPU).
    x = x_ref[...].astype(w1_ref.dtype)
    h = jnp.dot(x, w1_ref[...], preferred_element_type=jnp.float32)
    h = jnp.maximum(h + b1_ref[...], 0.0)
    y = jnp.dot(h.astype(w2_ref.dtype), w2_ref[...],
                preferred_element_type=jnp.float32)
    o_ref[...] = (y + b2_ref[...]).astype(o_ref.dtype)


def _mlp_kernel_tiled(x_ref, w1_ref, b1_ref, w2_ref, b2_ref, o_ref, h_ref):
    """Fallback for huge W2: 2-D grid (batch i, out-feature j).

    h = ReLU(x@W1+b1) is computed once per batch tile (at j == 0) into a VMEM
    scratch and reused for every out-feature tile (no layer-1 recompute).
    """
    @pl.when(pl.program_id(1) == 0)
    def _():
        x = x_ref[...].astype(w1_ref.dtype)
        h = jnp.dot(x, w1_ref[...], preferred_element_type=jnp.float32)
        h_ref[...] = jnp.maximum(h + b1_ref[...], 0.0)

    y = jnp.dot(h_ref[...].astype(w2_ref.dtype), w2_ref[...],
                preferred_element_type=jnp.float32)
    o_ref[...] = (y + b2_ref[...]).astype(o_ref.dtype)


@functools.partial(
    jax.jit,
    static_argnames=("block_batch", "block_out", "out_dtype", "vmem_cap"))
def _fused_mlp(x, w1, b1, w2, b2, *, block_batch, block_out, out_dtype,
               vmem_cap):
    n, f_in = x.shape
    hidden, f_out = w2.shape
    x_item = x.dtype.itemsize
    wt_item = w1.dtype.itemsize
    out_item = jnp.dtype(out_dtype).itemsize

    num_i = pl.cdiv(n, block_batch)

    def _bytes(a):
        return int(a.size) * a.dtype.itemsize

    if block_out is None:
        # ---- 1-D grid: weights resident, x/y streamed exactly once. --------
        grid = (num_i,)
        in_specs = [
            pl.BlockSpec((block_batch, f_in), lambda i: (i, 0)),   # x tile
            pl.BlockSpec((f_in, hidden), lambda i: (0, 0)),        # W1 (inv)
            pl.BlockSpec((1, hidden), lambda i: (0, 0)),           # b1 (inv)
            pl.BlockSpec((hidden, f_out), lambda i: (0, 0)),       # W2 (inv)
            pl.BlockSpec((1, f_out), lambda i: (0, 0)),            # b2 (inv)
        ]
        out_specs = pl.BlockSpec((block_batch, f_out), lambda i: (i, 0))
        scratch_shapes = ()
        kernel = _mlp_kernel_resident
        dim_sem = ("parallel",)          # v7x: batch tiles shard across 2 TCs
        vmem_needed = (
            2 * block_batch * f_in * x_item
            + 2 * f_in * hidden * wt_item + 2 * hidden * 4
            + 2 * hidden * f_out * wt_item + 2 * f_out * 4
            + 2 * block_batch * f_out * out_item
            + block_batch * hidden * 4 + block_batch * f_out * 4
            + (4 << 20))
        w2_streams = 1
    else:
        # ---- 2-D grid fallback: W2 tiled over out-features. ----------------
        num_j = pl.cdiv(f_out, block_out)
        grid = (num_i, num_j)
        in_specs = [
            pl.BlockSpec((block_batch, f_in), lambda i, j: (i, 0)),
            pl.BlockSpec((f_in, hidden), lambda i, j: (0, 0)),
            pl.BlockSpec((1, hidden), lambda i, j: (0, 0)),
            pl.BlockSpec((hidden, block_out), lambda i, j: (0, j)),
            pl.BlockSpec((1, block_out), lambda i, j: (0, j)),
        ]
        out_specs = pl.BlockSpec((block_batch, block_out),
                                 lambda i, j: (i, j))
        scratch_shapes = (pltpu.VMEM((block_batch, hidden), jnp.float32),)
        kernel = _mlp_kernel_tiled
        dim_sem = ("parallel", "arbitrary")
        vmem_needed = (
            2 * block_batch * f_in * x_item
            + 2 * f_in * hidden * wt_item + 2 * hidden * 4
            + 2 * hidden * block_out * wt_item + 2 * block_out * 4
            + 2 * block_batch * block_out * out_item
            + block_batch * hidden * 4 + block_batch * block_out * 4
            + (4 << 20))
        w2_streams = num_i

    cost = pl.CostEstimate(
        flops=2 * n * (f_in * hidden + hidden * f_out),
        transcendentals=0,
        bytes_accessed=(_bytes(x) + _bytes(w1) + _bytes(b1)
                        + w2_streams * (_bytes(w2) + _bytes(b2))
                        + n * f_out * out_item),
    )

    vmem_bytes = int(min(max(vmem_needed, 32 << 20), vmem_cap))

    return pl.pallas_call(
        kernel,
        out_shape=jax.ShapeDtypeStruct((n, f_out), out_dtype),
        grid_spec=pltpu.PrefetchScalarGridSpec(
            num_scalar_prefetch=0,
            grid=grid,
            in_specs=in_specs,
            out_specs=out_specs,
            scratch_shapes=scratch_shapes,
        ),
        compiler_params=pltpu.CompilerParams(
            dimension_semantics=dim_sem,
            vmem_limit_bytes=vmem_bytes,
        ),
        cost_estimate=cost,
    )(x, w1, b1, w2, b2)


def neural_network_forward(x, w1, b1, w2, b2, *, output_subset_indices=None,
                           block_batch=512, block_out=None,
                           param_dtype=jnp.bfloat16, out_dtype=jnp.float32):
    """Forward pass of the concrete NeuralNetwork (Linear -> ReLU -> Linear).

    Host-side glue is layout plumbing only:
      * restrict_to_output_subset: gather the needed W2/b2 columns *before*
        the kernel so restricted columns are never computed or written back.
      * weights (small) are cast once to `param_dtype`; x is passed untouched
        (its dtype/shape) and cast inside the kernel — no extra HBM pass over
        the big batch array, no padding, no output slice.
    bf16 weights are the default on all generations (f32 MXU accumulation);
    pass out_dtype=jnp.bfloat16 to halve output writeback traffic if the
    caller tolerates it.
    """
    n, f_in = x.shape
    hidden = w1.shape[1]

    if output_subset_indices is not None:
        idx = jnp.asarray(output_subset_indices, dtype=jnp.int32)
        w2 = jnp.take(w2, idx, axis=1)
        b2 = jnp.take(jnp.reshape(b2, (1, -1)), idx, axis=1)
    f_out = w2.shape[1]

    w1c = w1.astype(param_dtype)
    w2c = w2.astype(param_dtype)
    b1c = jnp.reshape(b1, (1, hidden)).astype(jnp.float32)
    b2c = jnp.reshape(b2, (1, f_out)).astype(jnp.float32)

    # Batch tile: full batch if small, else a multiple of 8 sublanes (512
    # default is also a multiple of 16/128).  Ragged final tiles are masked.
    if n <= block_batch:
        bb = n
    else:
        bb = max(_round_up(min(block_batch, n), _SUBLANE_F32), _SUBLANE_F32)

    cap = _vmem_cap_bytes()
    p_item = jnp.dtype(param_dtype).itemsize
    o_item = jnp.dtype(out_dtype).itemsize
    x_item = x.dtype.itemsize

    bo = block_out
    if bo is None:
        # Prefer the resident-W2 1-D grid; fall back to tiled f_out only if
        # the resident footprint would not fit the per-generation VMEM budget.
        resident_bytes = (
            2 * bb * f_in * x_item
            + 2 * f_in * hidden * p_item + 2 * hidden * 4
            + 2 * hidden * f_out * p_item + 2 * f_out * 4
            + 2 * bb * f_out * o_item
            + bb * hidden * 4 + bb * f_out * 4
            + (4 << 20))
        if resident_bytes > cap:
            bo = 512
    if bo is not None:
        bo = max(_round_up(min(bo, f_out), _LANE), _LANE)
        if bo >= f_out:
            bo = f_out  # full-dim block is always legal

    return _fused_mlp(x, w1c, b1c, w2c, b2c,
                      block_batch=bb, block_out=bo,
                      out_dtype=out_dtype, vmem_cap=cap)


def init_params(key, input_features, hidden_features, output_features):
    """Deterministic PyTorch-nn.Linear-style init (uniform +/- 1/sqrt(fan_in))."""
    k1, k2, k3, k4 = jax.random.split(key, 4)
    lim1 = 1.0 / jnp.sqrt(jnp.float32(input_features))
    lim2 = 1.0 / jnp.sqrt(jnp.float32(hidden_features))
    w1 = jax.random.uniform(k1, (input_features, hidden_features),
                            jnp.float32, -lim1, lim1)
    b1 = jax.random.uniform(k2, (1, hidden_features), jnp.float32, -lim1, lim1)
    w2 = jax.random.uniform(k3, (hidden_features, output_features),
                            jnp.float32, -lim2, lim2)
    b2 = jax.random.uniform(k4, (1, output_features), jnp.float32, -lim2, lim2)
    return w1, b1, w2, b2


if __name__ == "__main__":
    # Small shapes consistent with the module: a batch of feature vectors.
    batch = 64
    input_features = 16
    hidden_features = 32
    output_features = 8

    key = jax.random.PRNGKey(0)
    kx, kp, kq = jax.random.split(key, 3)
    x = jax.random.normal(kx, (batch, input_features), jnp.float32)
    w1, b1, w2, b2 = init_params(kp, input_features, hidden_features,
                                 output_features)

    # Plain-JAX reference (f32).
    y_ref = jnp.maximum(x @ w1 + b1, 0.0) @ w2 + b2

    # 1) f32 weights, resident-W2 1-D grid: strict check.
    y_f32 = neural_network_forward(x, w1, b1, w2, b2,
                                   param_dtype=jnp.float32)
    jax.block_until_ready(y_f32)
    assert y_f32.shape == (batch, output_features)
    assert jnp.allclose(y_f32, y_ref, atol=1e-5, rtol=1e-5)

    # 2) bf16 weights (default fast path on all generations): loose tolerance.
    y_bf16 = neural_network_forward(x, w1, b1, w2, b2,
                                    param_dtype=jnp.bfloat16)
    jax.block_until_ready(y_bf16)
    assert jnp.allclose(y_bf16, y_ref, atol=5e-2, rtol=5e-2)

    # 3) restrict_to_output_subset: W2/b2 columns gathered before the kernel,
    #    so only the requested outputs are computed and written back.
    current_output_subset_indices = [1, 3, 5]
    y_sub = neural_network_forward(
        x, w1, b1, w2, b2,
        output_subset_indices=current_output_subset_indices,
        param_dtype=jnp.float32)
    jax.block_until_ready(y_sub)
    assert jnp.allclose(
        y_sub, y_ref[:, jnp.asarray(current_output_subset_indices)],
        atol=1e-5, rtol=1e-5)

    # 4) Ragged batch + tiled-f_out fallback path (h-scratch kernel, masked
    #    boundary tiles): n not a multiple of the batch tile, f_out not a
    #    multiple of the out-feature tile.
    n2, f_out2 = 50, 300
    x2 = jax.random.normal(kq, (n2, input_features), jnp.float32)
    w1b, b1b, w2b, b2b = init_params(kp, input_features, hidden_features,
                                     f_out2)
    y2_ref = jnp.maximum(x2 @ w1b + b1b, 0.0) @ w2b + b2b
    y2 = neural_network_forward(x2, w1b, b1b, w2b, b2b,
                                block_batch=16, block_out=128,
                                param_dtype=jnp.float32)
    jax.block_until_ready(y2)
    assert y2.shape == (n2, f_out2)
    assert jnp.allclose(y2, y2_ref, atol=1e-5, rtol=1e-5)

    # TODO(synk): evaluate_and_gradient / partial_derivative use torch.autograd
    # loops; on JAX they are jax.jacfwd/jacrev over this forward (host-side
    # utilities, not part of the fused kernel hot path).
    print("KERNEL_OK")
</pallas_src>

<mosaic_0001>
module attributes {stable_mosaic.version = 11 : i64} {
  func.func @_mlp_kernel_resident(%arg0: i32, %arg1: memref<64x16xf32, #tpu.memory_space<vmem>>, %arg2: memref<16x32xf32, #tpu.memory_space<vmem>>, %arg3: memref<1x32xf32, #tpu.memory_space<vmem>>, %arg4: memref<32x8xf32, #tpu.memory_space<vmem>>, %arg5: memref<1x8xf32, #tpu.memory_space<vmem>>, %arg6: memref<64x8xf32, #tpu.memory_space<vmem>>) attributes {dimension_semantics = [#tpu.dimension_semantics<parallel>], iteration_bounds = array<i64: 1>, scalar_prefetch = 0 : i64, scratch_operands = 0 : i64, tpu.core_type = #tpu.core_type<tc>, window_params = [{transform_indices = @transform_0, window_bounds = array<i64: 64, 16>}, {pipeline_mode = #tpu.pipeline_mode<synchronous>, transform_indices = @transform_1, window_bounds = array<i64: 16, 32>}, {pipeline_mode = #tpu.pipeline_mode<synchronous>, transform_indices = @transform_2, window_bounds = array<i64: 1, 32>}, {pipeline_mode = #tpu.pipeline_mode<synchronous>, transform_indices = @transform_3, window_bounds = array<i64: 32, 8>}, {pipeline_mode = #tpu.pipeline_mode<synchronous>, transform_indices = @transform_4, window_bounds = array<i64: 1, 8>}, {transform_indices = @transform_5, window_bounds = array<i64: 64, 8>}]} {
    %c0 = arith.constant 0 : index
    %c0_0 = arith.constant 0 : index
    %0 = vector.load %arg1[%c0, %c0_0] : memref<64x16xf32, #tpu.memory_space<vmem>>, vector<64x16xf32>
    %c0_1 = arith.constant 0 : index
    %c0_2 = arith.constant 0 : index
    %1 = vector.load %arg2[%c0_1, %c0_2] : memref<16x32xf32, #tpu.memory_space<vmem>>, vector<16x32xf32>
    %cst = arith.constant dense<0.000000e+00> : vector<64x32xf32>
    %2 = tpu.matmul %0, %1, %cst {dimension_numbers = #tpu.dot_dimension_numbers<[1], [0], [0], [1], [0, 0, 1, 1], [], []>} : vector<64x16xf32>, vector<16x32xf32>, vector<64x32xf32> -> vector<64x32xf32>
    %c0_3 = arith.constant 0 : index
    %c0_4 = arith.constant 0 : index
    %3 = vector.load %arg3[%c0_3, %c0_4] : memref<1x32xf32, #tpu.memory_space<vmem>>, vector<1x32xf32>
    %4 = vector.broadcast %3 : vector<1x32xf32> to vector<64x32xf32>
    %5 = arith.addf %2, %4 : vector<64x32xf32>
    %cst_5 = arith.constant 0.000000e+00 : f32
    %6 = vector.broadcast %cst_5 : f32 to vector<64x32xf32>
    %7 = arith.maximumf %5, %6 : vector<64x32xf32>
    %c0_6 = arith.constant 0 : index
    %c0_7 = arith.constant 0 : index
    %8 = vector.load %arg4[%c0_6, %c0_7] : memref<32x8xf32, #tpu.memory_space<vmem>>, vector<32x8xf32>
    %cst_8 = arith.constant dense<0.000000e+00> : vector<64x8xf32>
    %9 = tpu.matmul %7, %8, %cst_8 {dimension_numbers = #tpu.dot_dimension_numbers<[1], [0], [0], [1], [0, 0, 1, 1], [], []>} : vector<64x32xf32>, vector<32x8xf32>, vector<64x8xf32> -> vector<64x8xf32>
    %c0_9 = arith.constant 0 : index
    %c0_10 = arith.constant 0 : index
    %10 = vector.load %arg5[%c0_9, %c0_10] : memref<1x8xf32, #tpu.memory_space<vmem>>, vector<1x8xf32>
    %11 = vector.broadcast %10 : vector<1x8xf32> to vector<64x8xf32>
    %12 = arith.addf %9, %11 : vector<64x8xf32>
    %c0_11 = arith.constant 0 : index
    %c0_12 = arith.constant 0 : index
    %13 = vector.load %arg6[%c0_11, %c0_12] : memref<64x8xf32, #tpu.memory_space<vmem>>, vector<64x8xf32>
    tpu.vector_store %arg6[%c0_11, %c0_12], %12 {strides = array<i32>} : memref<64x8xf32, #tpu.memory_space<vmem>>, vector<64x8xf32>,
    return
  }
  func.func @transform_0(%arg0: i32) -> (i32, i32) {
    %c0_i32 = arith.constant 0 : i32
    %c0_i32_0 = arith.constant 0 : i32
    return %arg0, %c0_i32 : i32, i32
  }
  func.func @transform_1(%arg0: i32) -> (i32, i32) {
    %c0_i32 = arith.constant 0 : i32
    %c0_i32_0 = arith.constant 0 : i32
    %c0_i32_1 = arith.constant 0 : i32
    return %c0_i32, %c0_i32_0 : i32, i32
  }
  func.func @transform_2(%arg0: i32) -> (i32, i32) {
    %c0_i32 = arith.constant 0 : i32
    %c0_i32_0 = arith.constant 0 : i32
    %c0_i32_1 = arith.constant 0 : i32
    return %c0_i32, %c0_i32_0 : i32, i32
  }
  func.func @transform_3(%arg0: i32) -> (i32, i32) {
    %c0_i32 = arith.constant 0 : i32
    %c0_i32_0 = arith.constant 0 : i32
    %c0_i32_1 = arith.constant 0 : i32
    return %c0_i32, %c0_i32_0 : i32, i32
  }
  func.func @transform_4(%arg0: i32) -> (i32, i32) {
    %c0_i32 = arith.constant 0 : i32
    %c0_i32_0 = arith.constant 0 : i32
    %c0_i32_1 = arith.constant 0 : i32
    return %c0_i32, %c0_i32_0 : i32, i32
  }
  func.func @transform_5(%arg0: i32) -> (i32, i32) {
    %c0_i32 = arith.constant 0 : i32
    %c0_i32_0 = arith.constant 0 : i32
    return %arg0, %c0_i32 : i32, i32
  }
}

</mosaic_0001>

<bundles_post_ra>
// kernel: _fused_mlp.1
= control target key start
LH: loop header
LB: loop body
LE: loop exit
PB: predicated region body
PF: predicated region fallthrough
CT: control target
= control target key end

     0   :  { %vm37_vm0 = vcmask 130048   ;;  %vm186_vm1 = vcmask 261120   ;;  %vm316_vm2 = vcmask 64512   ;;  %s543_s1 = inlined_call_operand.vmem [shape: f32[16,32], index: 1, kind: input, shape index: {}]   ;;  %s544_s0 = inlined_call_operand.vmem [shape: f32[64,16], index: 0, kind: input, shape index: {}]   ;;  %s545_s3 = inlined_call_operand.vmem [shape: f32[32,8], index: 3, kind: input, shape index: {}]   ;;  %s546_s2 = inlined_call_operand.vmem [shape: f32[1,32], index: 2, kind: input, shape index: {}]   ;;  %s547_s4 = inlined_call_operand.vmem [shape: f32[1,8], index: 4, kind: input, shape index: {}]   ;;  %s548_s5 = inlined_call_operand.vmem [shape: f32[64,8], index: 5, kind: output, shape index: {}]  }
   0x1   :  { %v28_v0 = vld [vmem:[%s543_s1] sm:$0xff]  ;;  %v29_v1 = vld [vmem:[%s543_s1 + $0x8] sm:$0xff]  ;;  %v22_v8 = vld [vmem:[%s544_s0 + $0x10] sm:$0xff] }
   0x2   :  { %v20_v2 = vld [vmem:[%s544_s0] sm:$0xff]  ;;  %v405_v3 = vpack.c.bf16 %v29_v1, %v28_v0  ;;  %v176_v5 = vld [vmem:[%s545_s3 + $0x8] sm:$0xff]  ;;  %v23_v9 = vld [vmem:[%s544_s0 + $0x18] sm:$0xff] }
   0x3   :  { %373 = vmatprep.mubr.msk.f32.mxu0 %vm37_vm0, %v20_v2  ;;  %v175_v4 = vld [vmem:[%s545_s3] sm:$0xff]  ;;  %v21_v6 = vld [vmem:[%s544_s0 + $0x8] sm:$0xff]  ;;  %v26_v12 = vld [vmem:[%s544_s0 + $0x30] sm:$0xff] }
   0x4   :  { %406 = vmatprep.subr.bf16.mxu0 %v405_v3  ;;  %v409_v7 = vpack.c.bf16 %v176_v5, %v175_v4  ;;  %v24_v10 = vld [vmem:[%s544_s0 + $0x20] sm:$0xff]  ;;  %v25_v11 = vld [vmem:[%s544_s0 + $0x28] sm:$0xff]  ;;  %v27_v13 = vld [vmem:[%s544_s0 + $0x38] sm:$0xff] }
   0x5   :  { %408 = vmatpush3.bf16.msra.mxu0 %v405_v3  ;;  %v177_v14 = vld [vmem:[%s545_s3 + $0x10] sm:$0xff]  ;;  %v178_v15 = vld [vmem:[%s545_s3 + $0x18] sm:$0xff]  ;;  %v329_v17 = vld [vmem:[%s546_s2] ss:$0 sm:$0xff] }
   0x6   :  { %410 = vmatprep.subr.bf16.mxu1 %v409_v7  ;;  %v413_v16 = vpack.c.bf16 %v178_v15, %v177_v14  ;;  %v338_v42 = vld [vmem:[%s547_s4] ss:$0 sm:$0xff] }
   0x7   :  { %412 = vmatpush3.bf16.msra.mxu1 %v409_v7 }
   0x8   :  { %374 = vmatmul.mubr.msk.f32.vlgmr.msra.gmra.mrb[0].mxu0 %vm37_vm0, %v21_v6  ;;  %414 = vmatprep.subr.bf16.mxu1 %v413_v16 }
   0x9   :  { %376 = vmatprep.mubr.msk.f32.mxu0 %vm37_vm0, %v22_v8 }
   0xb   :  { %416 = vmatpush3.bf16.msra.mxu1 %v413_v16 }
   0xc   :  { %377 = vmatmul.mubr.msk.f32.gmra.mrb[2].mxu0 %vm37_vm0, %v23_v9 }
   0xd   :  { %379 = vmatprep.mubr.msk.f32.mxu0 %vm37_vm0, %v24_v10 }
  0x10   :  { %380 = vmatmul.mubr.msk.f32.gmra.mrb[4].mxu0 %vm37_vm0, %v25_v11 }
  0x11   :  { %382 = vmatprep.mubr.msk.f32.mxu0 %vm37_vm0, %v26_v12 }
  0x14   :  { %383 = vmatmul.mubr.msk.f32.gmra.mrb[6].mxu0 %vm37_vm0, %v27_v13 }
  0xdb   :  { %v375_v18 = vpop.f32.mrb[0].mxu0 }
  0xdc   :  { %v134_v19 = vadd.f32 %v375_v18, %v329_v17  ;;  %v128_v20 = vpop.f32.mrb[1].mxu0 }
  0xdd   :  { %v129_v21 = vadd.f32 %v329_v17, %v128_v20 }
  0xde   :  { %v168_v24 = vmax.f32 %v134_v19, 0.0 }
  0xdf   :  { %v167_v22 = vmax.f32 %v129_v21, 0.0  ;;  %v378_v23 = vpop.f32.mrb[2].mxu0 }
  0xe0   :  { %v144_v25 = vadd.f32 %v378_v23, %v329_v17  ;;  %v138_v26 = vpop.f32.mrb[3].mxu0 }
  0xe1   :  { %v139_v27 = vadd.f32 %v329_v17, %v138_v26  ;;  %393 = vmatprep.mubr.msk.f32.mxu1 %vm186_vm1, %v167_v22 }
  0xe2   :  { %394 = vmatmul.mubr.msk.f32.vlgmr.msra.gmra.mrb[0].mxu1 %vm186_vm1, %v168_v24  ;;  %v170_v30 = vmax.f32 %v144_v25, 0.0 }
  0xe3   :  { %v169_v28 = vmax.f32 %v139_v27, 0.0  ;;  %v381_v29 = vpop.f32.mrb[4].mxu0 }
  0xe4   :  { %v154_v31 = vadd.f32 %v381_v29, %v329_v17  ;;  %v148_v32 = vpop.f32.mrb[5].mxu0 }
  0xe5   :  { %v149_v33 = vadd.f32 %v329_v17, %v148_v32  ;;  %396 = vmatprep.mubr.msk.f32.mxu1 %vm186_vm1, %v169_v28 }
  0xe6   :  { %397 = vmatmul.mubr.msk.f32.gmra.mrb[2].mxu1 %vm186_vm1, %v170_v30  ;;  %v172_v36 = vmax.f32 %v154_v31, 0.0 }
  0xe7   :  { %v171_v34 = vmax.f32 %v149_v33, 0.0  ;;  %v384_v35 = vpop.f32.mrb[6].mxu0 }
  0xe8   :  { %v164_v37 = vadd.f32 %v384_v35, %v329_v17  ;;  %v158_v38 = vpop.f32.mrb[7].mxu0 }
  0xe9   :  { %v159_v39 = vadd.f32 %v329_v17, %v158_v38  ;;  %399 = vmatprep.mubr.msk.f32.mxu1 %vm186_vm1, %v171_v34 }
  0xea   :  { %400 = vmatmul.mubr.msk.f32.gmra.mrb[4].mxu1 %vm186_vm1, %v172_v36  ;;  %v174_v41 = vmax.f32 %v164_v37, 0.0 }
  0xeb   :  { %v173_v40 = vmax.f32 %v159_v39, 0.0 }
  0xed   :  { %402 = vmatprep.mubr.msk.f32.mxu1 %vm186_vm1, %v173_v40 }
  0xee   :  { %403 = vmatmul.mubr.msk.f32.gmra.mrb[6].mxu1 %vm186_vm1, %v174_v41 }
 0x1b5   :  { %v395_v43 = vpop.f32.mrb[0].mxu1 }
 0x1b6   :  { %v283_v44 = vadd.f32 %v395_v43, %v338_v42  ;;  %v277_v45 = vpop.f32.mrb[1].mxu1 }
 0x1b7   :  { %v278_v46 = vadd.f32 %v338_v42, %v277_v45 }
 0x1b8   :  { %318 = vst.msk [vmem:[%s548_s5 + $0x8] sm:$0xff] %vm316_vm2, %v283_v44 }
 0x1b9   :  { %317 = vst.msk [vmem:[%s548_s5] sm:$0xff] %vm316_vm2, %v278_v46  ;;  %v398_v47 = vpop.f32.mrb[2].mxu1 }
 0x1ba   :  { %v293_v48 = vadd.f32 %v398_v47, %v338_v42  ;;  %v287_v49 = vpop.f32.mrb[3].mxu1 }
 0x1bb   :  { %v288_v50 = vadd.f32 %v338_v42, %v287_v49 }
 0x1bc   :  { %320 = vst.msk [vmem:[%s548_s5 + $0x18] sm:$0xff] %vm316_vm2, %v293_v48 }
 0x1bd   :  { %319 = vst.msk [vmem:[%s548_s5 + $0x10] sm:$0xff] %vm316_vm2, %v288_v50  ;;  %v401_v51 = vpop.f32.mrb[4].mxu1 }
 0x1be   :  { %v303_v52 = vadd.f32 %v401_v51, %v338_v42  ;;  %v297_v53 = vpop.f32.mrb[5].mxu1 }
 0x1bf   :  { %v298_v54 = vadd.f32 %v338_v42, %v297_v53 }
 0x1c0   :  { %322 = vst.msk [vmem:[%s548_s5 + $0x28] sm:$0xff] %vm316_vm2, %v303_v52 }
 0x1c1   :  { %321 = vst.msk [vmem:[%s548_s5 + $0x20] sm:$0xff] %vm316_vm2, %v298_v54  ;;  %v404_v55 = vpop.f32.mrb[6].mxu1 }
 0x1c2   :  { %v313_v56 = vadd.f32 %v404_v55, %v338_v42  ;;  %v307_v57 = vpop.f32.mrb[7].mxu1 }
 0x1c3   :  { %v308_v58 = vadd.f32 %v338_v42, %v307_v57 }
 0x1c4   :  { %324 = vst.msk [vmem:[%s548_s5 + $0x38] sm:$0xff] %vm316_vm2, %v313_v56 }
 0x1c5   :  { %323 = vst.msk [vmem:[%s548_s5 + $0x30] sm:$0xff] %vm316_vm2, %v308_v58 }

</bundles_post_ra>
